<compile_context>
chip_gen: v7x
topology: tpu7x:2x2x1
jax: 0.10.0
libtpu: 0.0.40
codegen_flags: <defaults>
</compile_context>

<pallas_src>
import jax
import jax.numpy as jnp
from jax import lax
from jax.experimental import pallas as pl
from jax.experimental.pallas import tpu as pltpu


def _round_up(x, m):
    return -(-x // m) * m


def _make_ppo_head_kernel(num_actions):
    """Fused policy+value head, rows-in-lanes layout.

    Refs: xT (K, TM), w1T (2H, K), b1T (2H, 1), w2T (R, 2H), b2T (R, 1),
    out (R, TM) with R = round_up(num_actions + 1, 8).
    Output rows [0, A) = softmax(policy logits), row A = value, rows > A = 0.
    """

    def kernel(xT_ref, w1T_ref, b1T_ref, w2T_ref, b2T_ref, out_ref):
        # ---- first layer (policy + value branches fused): (2H, TM) ----
        hT = jnp.tanh(
            jnp.dot(w1T_ref[...], xT_ref[...],
                    preferred_element_type=jnp.float32) + b1T_ref[...])

        # ---- second layer (policy logits + value fused): (R, TM) ----
        yT = jnp.dot(w2T_ref[...], hT,
                     preferred_element_type=jnp.float32) + b2T_ref[...]

        # Softmax over the policy rows only: reductions + exp run on the small
        # (R, TM) slab (R == 8), not a 128-lane-wide buffer.
        row = lax.broadcasted_iota(jnp.int32, yT.shape, 0)
        is_pi = row < num_actions
        logits = jnp.where(is_pi, yT, -jnp.inf)
        m = jnp.max(logits, axis=0, keepdims=True)
        e = jnp.exp(logits - m)                        # exactly 0 on masked rows
        denom = jnp.sum(e, axis=0, keepdims=True)
        r = pl.reciprocal(denom, approx=True)
        r = r * (2.0 - denom * r)                      # one Newton step (~1e-6 err)

        # rows [0,A) = pi; row A = v; padding rows keep their exact-zero y.
        out_ref[...] = jnp.where(is_pi, e * r, yT).astype(out_ref.dtype)

    return kernel


def init_ppo_head_params(key, input_size, output_size, hidden_size=64):
    """torch.nn.Linear-style init (uniform +-1/sqrt(fan_in)); weights stored
    transposed as (in_features, out_features)."""
    ks = jax.random.split(key, 8)

    def linear(kw, kb, fan_in, fan_out):
        bound = 1.0 / jnp.sqrt(fan_in)
        w = jax.random.uniform(kw, (fan_in, fan_out), jnp.float32, -bound, bound)
        b = jax.random.uniform(kb, (1, fan_out), jnp.float32, -bound, bound)
        return w, b

    w1p, b1p = linear(ks[0], ks[1], input_size, hidden_size)
    w2p, b2p = linear(ks[2], ks[3], hidden_size, output_size)
    w1v, b1v = linear(ks[4], ks[5], input_size, hidden_size)
    w2v, b2v = linear(ks[6], ks[7], hidden_size, 1)
    return (w1p, b1p, w2p, b2p, w1v, b1v, w2v, b2v)


def pack_ppo_head_params(params):
    """One-time fusion / transposition / padding of the policy+value weights
    (do this at init, not per forward call)."""
    w1p, b1p, w2p, b2p, w1v, b1v, w2v, b2v = [
        jnp.asarray(p, jnp.float32) for p in params
    ]
    hidden = int(w1p.shape[1])
    num_actions = int(w2p.shape[1])
    out_rows = _round_up(num_actions + 1, 8)           # pi rows + value row, 8-aligned

    # Fused first layer, transposed: (2H, input_size)
    w1T = jnp.concatenate([w1p, w1v], axis=1).T         # (2H, in)
    b1T = jnp.concatenate([b1p, b1v], axis=1).T         # (2H, 1)

    # Fused second layer, transposed + zero-padded to `out_rows` sublanes.
    w2T = jnp.zeros((out_rows, 2 * hidden), jnp.float32)
    w2T = w2T.at[:num_actions, :hidden].set(w2p.T)       # policy rows
    w2T = w2T.at[num_actions, hidden:].set(w2v[:, 0])    # value row
    b2T = jnp.zeros((out_rows, 1), jnp.float32)
    b2T = b2T.at[:num_actions, 0].set(b2p[0])
    b2T = b2T.at[num_actions, 0].set(b2v[0, 0])

    return {"w1T": w1T, "b1T": b1T, "w2T": w2T, "b2T": b2T,
            "num_actions": num_actions, "input_size": int(w1T.shape[1])}


def ppo_head_forward(state_variables, task, packed, *, tm_target=2048,
                     final_fn=lambda x: x, variables=None):
    """Mirrors PPOHead.forward: concat(state_variables + [task], dim=-1),
    flatten (T, B) -> N, policy softmax + value in one fused Pallas call.
    Returns [pi (N, output_size), v (N,)] (or fills `variables`)."""
    pieces = [jnp.asarray(p) for p in list(state_variables)] + [jnp.asarray(task)]
    T, B = pieces[0].shape[:2]
    N = T * B

    # Pack + transpose the input once (one fused XLA pass): x^T is (K, N),
    # fully sublane/lane-dense in VMEM (no lane padding, big-burst DMAs).
    x = jnp.concatenate(
        [p.reshape(N, p.shape[-1]).astype(jnp.float32) for p in pieces], axis=-1)
    K = int(x.shape[1])
    xT = x.T

    w1T, b1T, w2T, b2T = packed["w1T"], packed["b1T"], packed["w2T"], packed["b2T"]
    num_actions = int(packed["num_actions"])
    two_h = int(w1T.shape[0])
    out_rows = int(w2T.shape[0])
    assert K == int(packed["input_size"]), \
        "sum of piece feature dims must equal input_size"

    # ---- tile selection: N is now the LANE dim, so tiles are multiples of 128 ----
    tmt = max(128, (int(tm_target) // 128) * 128)
    n128 = _round_up(N, 128)
    g = -(-n128 // tmt)
    if g < 2 and n128 >= 256:
        g = 2                      # v7x megacore: keep both TensorCores busy
    tm = _round_up(-(-n128 // g), 128)
    n_pad = g * tm
    if n_pad != N:
        xT = jnp.pad(xT, ((0, 0), (0, n_pad - N)))

    cost = pl.CostEstimate(
        flops=2 * n_pad * (K * two_h + two_h * out_rows),
        transcendentals=n_pad * (two_h + out_rows),
        bytes_accessed=4 * (K * n_pad + out_rows * n_pad
                            + w1T.size + b1T.size + w2T.size + b2T.size),
    )

    def whole(a):
        nd = a.ndim
        return pl.BlockSpec(tuple(a.shape), lambda i, _nd=nd: (0,) * _nd)

    out = pl.pallas_call(
        _make_ppo_head_kernel(num_actions),
        out_shape=jax.ShapeDtypeStruct((out_rows, n_pad), jnp.float32),
        grid=(g,),
        in_specs=[
            pl.BlockSpec((K, tm), lambda i: (0, i)),          # x^T tiles
            whole(w1T), whole(b1T), whole(w2T), whole(b2T),   # VMEM-resident weights
        ],
        out_specs=pl.BlockSpec((out_rows, tm), lambda i: (0, i)),
        compiler_params=pltpu.CompilerParams(
            dimension_semantics=("parallel",),
            vmem_limit_bytes=32 * 1024 * 1024,   # ~2.5 MiB actually used at tm=2048
        ),
        cost_estimate=cost,
    )(xT, w1T, b1T, w2T, b2T)

    pi = final_fn(out[:num_actions, :N].T)    # (N, A)  -- tiny transpose-back
    v = final_fn(out[num_actions, :N])        # (N,)
    if variables is not None:
        variables["pi"] = pi
        variables["v"] = v
        return None
    return [pi, v]


def _reference_forward(state_variables, task, params):
    """Pure-JAX reference for correctness checking (unpacked params)."""
    w1p, b1p, w2p, b2p, w1v, b1v, w2v, b2v = params
    state = jnp.concatenate(list(state_variables) + [task], axis=-1)
    T, B = state.shape[:2]
    x = state.reshape(T * B, -1)
    logits = jnp.tanh(x @ w1p + b1p) @ w2p + b2p
    pi = jax.nn.softmax(logits, axis=-1)
    v = (jnp.tanh(x @ w1v + b1v) @ w2v + b2v).squeeze(-1)
    return pi, v


if __name__ == "__main__":
    key = jax.random.PRNGKey(0)
    k_sv1, k_sv2, k_task, k_params = jax.random.split(key, 4)

    # Case 1: small shapes (T=2, B=4), two state variables (12, 12) + task (8)
    # -> input_size = 32; output_size = 7; hidden = 32.
    T, B = 2, 4
    sv1 = jax.random.normal(k_sv1, (T, B, 12), jnp.float32)
    sv2 = jax.random.normal(k_sv2, (T, B, 12), jnp.float32)
    task = jax.random.normal(k_task, (T, B, 8), jnp.float32)

    input_size, output_size, hidden_size = 32, 7, 32
    params = init_ppo_head_params(k_params, input_size, output_size, hidden_size)
    packed = pack_ppo_head_params(params)

    pi, v = ppo_head_forward([sv1, sv2], task, packed)
    jax.block_until_ready(pi)
    jax.block_until_ready(v)
    pi_ref, v_ref = _reference_forward([sv1, sv2], task, params)
    assert pi.shape == (T * B, output_size)
    assert v.shape == (T * B,)
    assert jnp.allclose(pi, pi_ref, atol=1e-5, rtol=1e-5)
    assert jnp.allclose(v, v_ref, atol=1e-5, rtol=1e-5)
    assert jnp.allclose(jnp.sum(pi, axis=-1), 1.0, atol=1e-5)

    # variables-dict path (mirrors the module API)
    vdict = {}
    ppo_head_forward([sv1, sv2], task, packed, variables=vdict)
    assert jnp.allclose(vdict["pi"], pi_ref, atol=1e-5, rtol=1e-5)
    assert jnp.allclose(vdict["v"], v_ref, atol=1e-5, rtol=1e-5)

    # Case 2: multi-tile grid + ragged padding (N = 320 -> 3 tiles of 128 lanes).
    T2, B2 = 4, 80
    sv1b = jax.random.normal(k_sv1, (T2, B2, 12), jnp.float32)
    sv2b = jax.random.normal(k_sv2, (T2, B2, 12), jnp.float32)
    taskb = jax.random.normal(k_task, (T2, B2, 8), jnp.float32)
    pib, vb = ppo_head_forward([sv1b, sv2b], taskb, packed, tm_target=128)
    jax.block_until_ready(pib)
    jax.block_until_ready(vb)
    pib_ref, vb_ref = _reference_forward([sv1b, sv2b], taskb, params)
    assert pib.shape == (T2 * B2, output_size)
    assert vb.shape == (T2 * B2,)
    assert jnp.allclose(pib, pib_ref, atol=1e-5, rtol=1e-5)
    assert jnp.allclose(vb, vb_ref, atol=1e-5, rtol=1e-5)
    assert jnp.allclose(jnp.sum(pib, axis=-1), 1.0, atol=1e-5)

    # Case 3: N = 1024 with default tm_target -> forced split into >= 2 tiles
    # so both v7x TensorCores get work (tm = 512, grid = 2).
    T3, B3 = 8, 128
    sv1c = jax.random.normal(k_sv1, (T3, B3, 12), jnp.float32)
    sv2c = jax.random.normal(k_sv2, (T3, B3, 12), jnp.float32)
    taskc = jax.random.normal(k_task, (T3, B3, 8), jnp.float32)
    pic, vc = ppo_head_forward([sv1c, sv2c], taskc, packed)
    jax.block_until_ready(pic)
    jax.block_until_ready(vc)
    pic_ref, vc_ref = _reference_forward([sv1c, sv2c], taskc, params)
    assert jnp.allclose(pic, pic_ref, atol=1e-5, rtol=1e-5)
    assert jnp.allclose(vc, vc_ref, atol=1e-5, rtol=1e-5)

    print("KERNEL_OK")
</pallas_src>

<mosaic_0001>
module attributes {stable_mosaic.version = 11 : i64} {
  func.func @kernel(%arg0: i32, %arg1: memref<32x128xf32, #tpu.memory_space<vmem>>, %arg2: memref<64x32xf32, #tpu.memory_space<vmem>>, %arg3: memref<64x1xf32, #tpu.memory_space<vmem>>, %arg4: memref<8x64xf32, #tpu.memory_space<vmem>>, %arg5: memref<8x1xf32, #tpu.memory_space<vmem>>, %arg6: memref<8x128xf32, #tpu.memory_space<vmem>>) attributes {dimension_semantics = [#tpu.dimension_semantics<parallel>], iteration_bounds = array<i64: 1>, scalar_prefetch = 0 : i64, scratch_operands = 0 : i64, tpu.core_type = #tpu.core_type<tc>, window_params = [{transform_indices = @transform_0, window_bounds = array<i64: 32, 128>}, {pipeline_mode = #tpu.pipeline_mode<synchronous>, transform_indices = @transform_1, window_bounds = array<i64: 64, 32>}, {pipeline_mode = #tpu.pipeline_mode<synchronous>, transform_indices = @transform_2, window_bounds = array<i64: 64, 1>}, {pipeline_mode = #tpu.pipeline_mode<synchronous>, transform_indices = @transform_3, window_bounds = array<i64: 8, 64>}, {pipeline_mode = #tpu.pipeline_mode<synchronous>, transform_indices = @transform_4, window_bounds = array<i64: 8, 1>}, {transform_indices = @transform_5, window_bounds = array<i64: 8, 128>}]} {
    %c0 = arith.constant 0 : index
    %c0_0 = arith.constant 0 : index
    %0 = vector.load %arg2[%c0, %c0_0] : memref<64x32xf32, #tpu.memory_space<vmem>>, vector<64x32xf32>
    %c0_1 = arith.constant 0 : index
    %c0_2 = arith.constant 0 : index
    %1 = vector.load %arg1[%c0_1, %c0_2] : memref<32x128xf32, #tpu.memory_space<vmem>>, vector<32x128xf32>
    %cst = arith.constant dense<0.000000e+00> : vector<64x128xf32>
    %2 = tpu.matmul %0, %1, %cst {dimension_numbers = #tpu.dot_dimension_numbers<[1], [0], [0], [1], [0, 0, 1, 1], [], []>} : vector<64x32xf32>, vector<32x128xf32>, vector<64x128xf32> -> vector<64x128xf32>
    %c0_3 = arith.constant 0 : index
    %c0_4 = arith.constant 0 : index
    %3 = vector.load %arg3[%c0_3, %c0_4] : memref<64x1xf32, #tpu.memory_space<vmem>>, vector<64x1xf32>
    %4 = vector.broadcast %3 : vector<64x1xf32> to vector<64x128xf32>
    %5 = arith.addf %2, %4 : vector<64x128xf32>
    %6 = math.tanh %5 : vector<64x128xf32>
    %c0_5 = arith.constant 0 : index
    %c0_6 = arith.constant 0 : index
    %7 = vector.load %arg4[%c0_5, %c0_6] : memref<8x64xf32, #tpu.memory_space<vmem>>, vector<8x64xf32>
    %cst_7 = arith.constant dense<0.000000e+00> : vector<8x128xf32>
    %8 = tpu.matmul %7, %6, %cst_7 {dimension_numbers = #tpu.dot_dimension_numbers<[1], [0], [0], [1], [0, 0, 1, 1], [], []>} : vector<8x64xf32>, vector<64x128xf32>, vector<8x128xf32> -> vector<8x128xf32>
    %c0_8 = arith.constant 0 : index
    %c0_9 = arith.constant 0 : index
    %9 = vector.load %arg5[%c0_8, %c0_9] : memref<8x1xf32, #tpu.memory_space<vmem>>, vector<8x1xf32>
    %10 = vector.broadcast %9 : vector<8x1xf32> to vector<8x128xf32>
    %11 = arith.addf %8, %10 : vector<8x128xf32>
    %12 = tpu.iota {dimensions = array<i32: 0>} : vector<8x128xi32>
    %c7_i32 = arith.constant 7 : i32
    %13 = vector.broadcast %c7_i32 : i32 to vector<8x128xi32>
    %14 = arith.cmpi slt, %12, %13 : vector<8x128xi32>
    %cst_10 = arith.constant 0xFF800000 : f32
    %15 = vector.broadcast %cst_10 : f32 to vector<8x128xf32>
    %16 = arith.select %14, %11, %15 : vector<8x128xi1>, vector<8x128xf32>
    %cst_11 = arith.constant dense<0xFF800000> : vector<128xf32>
    %17 = vector.multi_reduction <maximumf>, %16, %cst_11 [0] : vector<8x128xf32> to vector<128xf32>
    %18 = vector.shape_cast %17 : vector<128xf32> to vector<1x128xf32>
    %19 = vector.broadcast %18 : vector<1x128xf32> to vector<8x128xf32>
    %20 = arith.subf %16, %19 : vector<8x128xf32>
    %21 = math.exp %20 : vector<8x128xf32>
    %cst_12 = arith.constant dense<0.000000e+00> : vector<128xf32>
    %22 = vector.multi_reduction <add>, %21, %cst_12 [0] : vector<8x128xf32> to vector<128xf32>
    %23 = vector.shape_cast %22 : vector<128xf32> to vector<1x128xf32>
    %24 = tpu.reciprocal %23 {approx = true} : vector<1x128xf32> -> vector<1x128xf32>
    %25 = arith.mulf %23, %24 : vector<1x128xf32>
    %cst_13 = arith.constant 2.000000e+00 : f32
    %26 = vector.broadcast %cst_13 : f32 to vector<1x128xf32>
    %27 = arith.subf %26, %25 : vector<1x128xf32>
    %28 = arith.mulf %24, %27 : vector<1x128xf32>
    %29 = vector.broadcast %28 : vector<1x128xf32> to vector<8x128xf32>
    %30 = arith.mulf %21, %29 : vector<8x128xf32>
    %31 = arith.select %14, %30, %11 : vector<8x128xi1>, vector<8x128xf32>
    %c0_14 = arith.constant 0 : index
    %c0_15 = arith.constant 0 : index
    %32 = vector.load %arg6[%c0_14, %c0_15] : memref<8x128xf32, #tpu.memory_space<vmem>>, vector<8x128xf32>
    tpu.vector_store %arg6[%c0_14, %c0_15], %31 {strides = array<i32>} : memref<8x128xf32, #tpu.memory_space<vmem>>, vector<8x128xf32>,
    return
  }
  func.func @transform_0(%arg0: i32) -> (i32, i32) {
    %c0_i32 = arith.constant 0 : i32
    %c0_i32_0 = arith.constant 0 : i32
    return %c0_i32, %arg0 : i32, i32
  }
  func.func @transform_1(%arg0: i32) -> (i32, i32) {
    %c0_i32 = arith.constant 0 : i32
    %c0_i32_0 = arith.constant 0 : i32
    %c0_i32_1 = arith.constant 0 : i32
    return %c0_i32, %c0_i32_0 : i32, i32
  }
  func.func @transform_2(%arg0: i32) -> (i32, i32) {
    %c0_i32 = arith.constant 0 : i32
    %c0_i32_0 = arith.constant 0 : i32
    %c0_i32_1 = arith.constant 0 : i32
    return %c0_i32, %c0_i32_0 : i32, i32
  }
  func.func @transform_3(%arg0: i32) -> (i32, i32) {
    %c0_i32 = arith.constant 0 : i32
    %c0_i32_0 = arith.constant 0 : i32
    %c0_i32_1 = arith.constant 0 : i32
    return %c0_i32, %c0_i32_0 : i32, i32
  }
  func.func @transform_4(%arg0: i32) -> (i32, i32) {
    %c0_i32 = arith.constant 0 : i32
    %c0_i32_0 = arith.constant 0 : i32
    %c0_i32_1 = arith.constant 0 : i32
    return %c0_i32, %c0_i32_0 : i32, i32
  }
  func.func @transform_5(%arg0: i32) -> (i32, i32) {
    %c0_i32 = arith.constant 0 : i32
    %c0_i32_0 = arith.constant 0 : i32
    return %c0_i32, %arg0 : i32, i32
  }
}

</mosaic_0001>

<bundles_post_ra>
// kernel: tpu_custom_call.1
= control target key start
LH: loop header
LB: loop body
LE: loop exit
PB: predicated region body
PF: predicated region fallthrough
CT: control target
= control target key end

     0   :  { %vm81_vm0 = vcmask 261120   ;;  %v480_v6 = vmov 0   ;;  %s603_s0 = inlined_call_operand.vmem [shape: f32[32,128], index: 0, kind: input, shape index: {}]   ;;  %s604_s1 = inlined_call_operand.vmem [shape: f32[64,32], index: 1, kind: input, shape index: {}]   ;;  %s605_s2 = inlined_call_operand.vmem [shape: f32[64,1], index: 2, kind: input, shape index: {}]   ;;  %s606_s3 = inlined_call_operand.vmem [shape: f32[8,64], index: 3, kind: input, shape index: {}]   ;;  %s607_s4 = inlined_call_operand.vmem [shape: f32[8,1], index: 4, kind: input, shape index: {}]   ;;  %s608_s5 = inlined_call_operand.hbm [shape: f32[8,128], index: 5, kind: output, shape index: {}]  }
   0x1   :  { %v29_v0 = vld [vmem:[%s603_s0] sm:$0xff]  ;;  %v30_v1 = vld [vmem:[%s603_s0 + $0x8] sm:$0xff]  ;;  %v31_v2 = vld [vmem:[%s603_s0 + $0x10] sm:$0xff]  ;;  %434 = vset.pattern.permute.xlu0 %v480_v6  ;;  %435 = vset.pattern.permute.xlu1 %v480_v6 }
   0x2   :  { %v409_v3 = vpack.c.bf16 %v30_v1, %v29_v0  ;;  %v32_v4 = vld [vmem:[%s603_s0 + $0x18] sm:$0xff]  ;;  %v21_v5 = vld [vmem:[%s604_s1] sm:$0xff]  ;;  %v35_v9 = vld [vmem:[%s605_s2 + $0x10] sm:$0xff] }
   0x3   :  { %v413_v7 = vpack.c.bf16 %v32_v4, %v31_v2  ;;  %378 = vmatprep.mubr.msk.f32.mxu0 %vm81_vm0, %v21_v5  ;;  %v33_v8 = vld [vmem:[%s605_s2] sm:$0xff]  ;;  %v34_v10 = vld [vmem:[%s605_s2 + $0x8] sm:$0xff]  ;;  %53 = vperm.xlu1 %435, %v35_v9   ;;  %v36_v11 = vld [vmem:[%s605_s2 + $0x18] sm:$0xff] }
   0x4   :  { %410 = vmatprep.subr.bf16.mxu0 %v409_v3  ;;  %43 = vperm.xlu0 %434, %v33_v8  }
   0x5   :  { %412 = vmatpush3.bf16.msra.mxu0 %v409_v3 }
   0x6   :  { %414 = vmatprep.subr.bf16.mxu0 %v413_v7 }
   0x7   :  { %10 = vsyncpa [#allocation3], 0  ;;  %v22_v12 = vld [vmem:[%s604_s1 + $0x8] sm:$0xff]  ;;  %v23_v13 = vld [vmem:[%s604_s1 + $0x10] sm:$0xff]  ;;  %58 = vperm.xlu1 %435, %v36_v11   ;;  %v481_v24 = vmov 0.0|0.0   ;;  %vm482_vm1 = vmmov 0   ;;  %v300_v63 = vlaneseq }
   0x8   :  { %48 = vperm.xlu0 %434, %v34_v10   ;;  %v37_v14 = vld [vmem:[%s605_s2 + $0x20] sm:$0xff]  ;;  %v38_v15 = vld [vmem:[%s605_s2 + $0x28] sm:$0xff]  ;;  %v24_v16 = vld [vmem:[%s604_s1 + $0x18] sm:$0xff]  ;;  %417 = vmatprep.subr.bf16.mxu1 %v481_v24  ;;  %v483_v25 = vmov 0.0   ;;  %vm226_vm2 = vcmask 523264  }
   0x9   :  { %416 = vmatpush3.bf16.msra.mxu0 %v413_v7  ;;  %v25_v17 = vld [vmem:[%s604_s1 + $0x20] sm:$0xff]  ;;  %v39_v18 = vld [vmem:[%s605_s2 + $0x30] sm:$0xff]  ;;  %v40_v19 = vld [vmem:[%s605_s2 + $0x38] sm:$0xff]  ;;  %406 = vmatprep.mubr.msk.f32.mxu1 %vm482_vm1, %v483_v25  ;;  %v301_v0 = vshrl.u32 %v300_v63, 7 }
   0xa   :  { %v26_v20 = vld [vmem:[%s604_s1 + $0x28] sm:$0xff]  ;;  %v27_v21 = vld [vmem:[%s604_s1 + $0x30] sm:$0xff]  ;;  %v220_v22 = vld [vmem:[%s607_s4] sm:$0xff] }
   0xb   :  { %68 = vperm.xlu1 %435, %v38_v15   ;;  %v28_v23 = vld [vmem:[%s604_s1 + $0x38] sm:$0xff]  ;;  %v219_v62 = vld [vmem:[%s606_s3] sm:$0xff]  ;;  %vm302_vm3 = vcmp.lt.s32.totalorder %v301_v0, 7  ;;  %s484_s3 = smov [#allocation2]  }
   0xc   :  { %379 = vmatmul.mubr.msk.f32.vlgmr.msra.gmra.mrb[0].mxu0 %vm81_vm0, %v22_v12  ;;  %63 = vperm.xlu0 %434, %v37_v14   ;;  %s332_s7 = sshll.u32 %s484_s3, 4  ;;  %s333_s7 = int_to_ptr.vmem [resolvable:$true] %s332_s7 }
   0xd   :  { %381 = vmatprep.mubr.msk.f32.mxu0 %vm81_vm0, %v23_v13  ;;  %s456_s8 = scalar_lea.vmem %s333_s7, 128  ;;  %p461_p1 = scmp.lt.s32.totalorder %s333_s7, %s333_s7 }
   0xe   :  { %p457_p0 = scmp.ne.s32.totalorder %s333_s7, %s456_s8  ;;  %p462_p2 = scmp.lt.s32.totalorder %s456_s8, %s456_s8 }
   0xf   :  { %78 = vperm.xlu1 %435, %v40_v19  }
  0x10   :  { %382 = vmatmul.mubr.msk.f32.gmra.mrb[2].mxu0 %vm81_vm0, %v24_v16  ;;  %73 = vperm.xlu0 %434, %v39_v18   ;;  %p463_p3 = por %p462_p2, %p461_p1 }
  0x11   :  { %384 = vmatprep.mubr.msk.f32.mxu0 %vm81_vm0, %v25_v17 }
  0x12   :  { %p464_p4 = pnand %p463_p3, %p457_p0 }
  0x14   :  { %385 = vmatmul.mubr.msk.f32.gmra.mrb[4].mxu0 %vm81_vm0, %v26_v20  ;;  %223 = vperm.xlu0 %434, %v220_v22  }
  0x15   :  { %387 = vmatprep.mubr.msk.f32.mxu0 %vm81_vm0, %v27_v21 }
  0x18   :  { %388 = vmatmul.mubr.msk.f32.gmra.mrb[6].mxu0 %vm81_vm0, %v28_v23 }
  0x82   :  { %v54_v27 = vpop.permute.xlu1 %53 }
  0x83   :  { %v44_v26 = vpop.permute.xlu0 %43 }
  0x86   :  { %v59_v29 = vpop.permute.xlu1 %58 }
  0x87   :  { %v49_v28 = vpop.permute.xlu0 %48 }
  0x8a   :  { %v69_v37 = vpop.permute.xlu1 %68 }
  0x8b   :  { %v64_v39 = vpop.permute.xlu0 %63 }
  0x8e   :  { %v79_v44 = vpop.permute.xlu1 %78 }
  0x8f   :  { %v74_v47 = vpop.permute.xlu0 %73 }
  0x93   :  { %v224_v1 = vpop.permute.xlu0 %223 }
  0xdf   :  { %v380_v30 = vpop.f32.mrb[0].mxu0 }
  0xe0   :  { %v178_v31 = vadd.f32 %v380_v30, %v49_v28  ;;  %v172_v32 = vpop.f32.mrb[1].mxu0 }
  0xe1   :  { %v173_v33 = vadd.f32 %v172_v32, %v44_v26 }
  0xe2   :  { %436 = vtanh.f32 %v178_v31 }
  0xe3   :  { %438 = vtanh.f32 %v173_v33  ;;  %v383_v34 = vpop.f32.mrb[2].mxu0 }
  0xe4   :  { %v188_v35 = vadd.f32 %v383_v34, %v59_v29  ;;  %v182_v36 = vpop.f32.mrb[3].mxu0 }
  0xe5   :  { %v183_v38 = vadd.f32 %v182_v36, %v54_v27 }
  0xe6   :  { %440 = vtanh.f32 %v188_v35 }
  0xe7   :  { %442 = vtanh.f32 %v183_v38  ;;  %v386_v40 = vpop.f32.mrb[4].mxu0 }
  0xe8   :  { %v198_v41 = vadd.f32 %v386_v40, %v69_v37  ;;  %v192_v42 = vpop.f32.mrb[5].mxu0 }
  0xe9   :  { %v193_v43 = vadd.f32 %v192_v42, %v64_v39 }
  0xea   :  { %444 = vtanh.f32 %v198_v41 }
  0xeb   :  { %446 = vtanh.f32 %v193_v43  ;;  %v389_v45 = vpop.f32.mrb[6].mxu0 }
  0xec   :  { %v437_v46 = vpop.eup %436  ;;  %v208_v48 = vadd.f32 %v389_v45, %v79_v44  ;;  %v202_v49 = vpop.f32.mrb[7].mxu0 }
  0xed   :  { %v439_v50 = vpop.eup %438  ;;  %v203_v51 = vadd.f32 %v202_v49, %v74_v47 }
  0xee   :  { %448 = vtanh.f32 %v208_v48  ;;  %v418_v52 = vpack.c.bf16 %v437_v46, %v439_v50 }
  0xef   :  { %450 = vtanh.f32 %v203_v51 }
  0xf0   :  { %v441_v53 = vpop.eup %440  ;;  %419 = vmatpush3.bf16.msra.mxu1 %v418_v52 }
  0xf1   :  { %v443_v54 = vpop.eup %442  ;;  %420 = vmatprep.subr.bf16.mxu1 %v481_v24 }
  0xf2   :  { %v421_v55 = vpack.c.bf16 %v441_v53, %v443_v54 }
  0xf4   :  { %v445_v56 = vpop.eup %444  ;;  %422 = vmatpush3.bf16.msra.mxu1 %v421_v55 }
  0xf5   :  { %v447_v57 = vpop.eup %446  ;;  %423 = vmatprep.subr.bf16.mxu1 %v481_v24 }
  0xf6   :  { %v424_v58 = vpack.c.bf16 %v445_v56, %v447_v57 }
  0xf8   :  { %v449_v59 = vpop.eup %448  ;;  %425 = vmatpush3.bf16.msra.mxu1 %v424_v58 }
  0xf9   :  { %v451_v60 = vpop.eup %450  ;;  %426 = vmatprep.subr.bf16.mxu1 %v481_v24 }
  0xfa   :  { %v427_v61 = vpack.c.bf16 %v449_v59, %v451_v60 }
  0xfc   :  { %428 = vmatpush3.bf16.msra.mxu1 %v427_v61 }
  0xff   :  { %407 = vmatmul.mubr.msk.f32.vlgmr.msra.gmra.mrb[0].mxu1 %vm226_vm2, %v219_v62 }
 0x1d2   :  { %v296_v2 = vpop.f32.mrb[0].mxu1 }
 0x1d3   :  { %v297_v3 = vadd.f32 %v296_v2, %v224_v1  ;;  %v408_v4 = vpop.f32.mrb[1].mxu1 }
 0x1d5   :  { %v303_v5 = vsel %vm302_vm3, %v297_v3, -inf }
 0x1d6   :  { %v304_v6 = vrot.slane %v303_v5, 4 }
 0x1d8   :  { %v305_v7 = vmax.f32 %v303_v5, %v304_v6 }
 0x1da   :  { %v306_v8 = vrot.slane %v305_v7, 2 }
 0x1dc   :  { %v307_v9 = vmax.f32 %v305_v7, %v306_v8 }
 0x1de   :  { %v308_v10 = vrot.slane %v307_v9, 1 }
 0x1e0   :  { %v309_v11 = vmax.f32 %v307_v9, %v308_v10 }
 0x1e2   :  { %v310_v12 = vsub.f32 %v303_v5, %v309_v11 }
 0x1e4   :  { %v311_v13 = vmul.f32 1.442695, %v310_v12 }
 0x1e6   :  { %452 = vpow2.f32 %v311_v13 }
 0x1f0   :  { %v453_v14 = vpop.eup %452 }
 0x1f1   :  { %v313_v15 = vrot.slane %v453_v14, 4 }
 0x1f3   :  { %v314_v16 = vadd.f32 %v453_v14, %v313_v15 }
 0x1f5   :  { %v315_v17 = vrot.slane %v314_v16, 2 }
 0x1f7   :  { %v316_v18 = vadd.f32 %v315_v17, %v314_v16 }
 0x1f9   :  { %v317_v19 = vrot.slane %v316_v18, 1 }
 0x1fb   :  { %v318_v20 = vadd.f32 %v317_v19, %v316_v18 }
 0x1fd   :  { %454 = vrcp.f32 %v318_v20 }
 0x207   :  { %v455_v21 = vpop.eup %454 }
 0x208   :  { %v320_v22 = vmul.f32 %v455_v21, %v318_v20 }
 0x20a   :  { %v321_v23 = vsub.f32 2.0, %v320_v22 }
 0x20c   :  { %v322_v24 = vmul.f32 %v455_v21, %v321_v23 }
 0x20e   :  { %v323_v25 = vmul.f32 %v453_v14, %v322_v24 }
 0x210   :  { %v324_v26 = vsel %vm302_vm3, %v323_v25, %v297_v3 }
 0x211   :  { %325 = vst [vmem:[#allocation2] sm:$0xff] %v324_v26 }
 0x212   :  { %467 = shalt.err (!%p464_p4)
}
 0x213   :  { %s468_s11 = scalar_lea.hbm %s608_s5, 128 }
 0x214   :  { %p469_p5 = scmp.ne.s32.totalorder %s608_s5, %s468_s11  ;;  %p472_p6 = scmp.lt.u32.totalorder %s468_s11, %s608_s5 }
 0x216   :  { %p474_p7 = pnand %p472_p6, %p469_p5 }
 0x218   :  { %477 = shalt.err (!%p474_p7)
}
 0x219   :  { %335 = dma.vmem_to_hbm [thread:$0]  %s333_s7, 128, %s608_s5, [#allocation3]  }
 0x21a   :  { %478 = dma.done.wait [#allocation3], 128  }
 0x21b   :  { %479 = vsyncadd [#allocation3], 4294967168 }
 0x21c   :  { %339 = vsyncpa [#allocation3], 1 }

</bundles_post_ra>
